<compile_context>
chip_gen: v7x
topology: tpu7x:2x2x1
jax: 0.10.0
libtpu: 0.0.40
codegen_flags: <defaults>
</compile_context>

<pallas_src>
import functools

import jax
import jax.numpy as jnp
from jax import lax
from jax.experimental import pallas as pl
from jax.experimental.pallas import tpu as pltpu


def _dwconv_kernel(x_ref, w_ref, o_ref, xp_ref, *, K, stride, pad, n_h):
    """Depthwise KxK conv for one (image, output-row-tile) grid step.

    x_ref : (1, H,  W,  C)   full channels-last image (resident across h steps)
    w_ref : (K, K, C)        per-lane filter taps (resident)
    o_ref : (1, tho, Wo, C)  output row-block for this step
    xp_ref: (TIN, W+2p, C)   scratch, input dtype: padded input rows for tile
    """
    H = x_ref.shape[1]
    W = x_ref.shape[2]
    C = x_ref.shape[3]
    tho = o_ref.shape[1]
    Wo = o_ref.shape[2]
    TIN = xp_ref.shape[0]

    h = pl.program_id(1)
    r0 = h * (tho * stride) - pad          # first input row needed (may be <0)

    # --- zero ONLY the left/right halo column strips (not the whole slab). ---
    if pad > 0:
        zcol = jnp.zeros((TIN, pad, C), xp_ref.dtype)
        xp_ref[:, 0:pad, :] = zcol
        xp_ref[:, pad + W:, :] = zcol

    # --- copy the TIN needed input rows into the scratch interior. ----------
    # Rows that can never fall outside [0, H) (true for all interior tiles)
    # get an unconditional copy; only the few possible halo rows are guarded.
    zrow = jnp.zeros((1, W, C), xp_ref.dtype)
    for i in range(TIN):
        r = r0 + i
        may_lo = (i - pad) < 0                                     # h == 0 case
        may_hi = ((n_h - 1) * tho * stride - pad + i) >= H         # last tile
        if may_lo or may_hi:
            valid = jnp.logical_and(r >= 0, r < H)
            rc = jnp.clip(r, 0, H - 1)

            @pl.when(valid)
            def _copy(i=i, rc=rc):
                xp_ref[i:i + 1, pad:pad + W, :] = (
                    x_ref[0, pl.ds(rc, 1), :, :].astype(xp_ref.dtype))

            @pl.when(jnp.logical_not(valid))
            def _zero(i=i):
                xp_ref[i:i + 1, pad:pad + W, :] = zrow
        else:
            xp_ref[i:i + 1, pad:pad + W, :] = (
                x_ref[0, pl.ds(r, 1), :, :].astype(xp_ref.dtype))

    # --- K*K tap accumulation over the row block (f32 accumulator only). ----
    # Taps are ref-sliced (plain address-offset / strided vector loads); the
    # padded slab is never materialised as one big value.
    acc = jnp.zeros((tho, Wo, C), jnp.float32)
    for ki in range(K):
        for kj in range(K):
            if stride == 1:
                tap = xp_ref[ki:ki + tho, kj:kj + Wo, :]
            else:
                tap = xp_ref[pl.ds(ki, tho, stride), pl.ds(kj, Wo, stride), :]
            wk = w_ref[ki, kj, :].astype(jnp.float32)      # (C,) lane weights
            acc = acc + tap.astype(jnp.float32) * wk

    o_ref[0, :, :, :] = acc.astype(o_ref.dtype)


def _pick_group(N, Cw, lane_target=128):
    """Largest divisor G of N with G*Cw <= lane_target (lane-density fold)."""
    if Cw >= lane_target:
        return 1
    g = max(1, min(N, lane_target // Cw))
    while N % g != 0:
        g -= 1
    return g


def _pick_row_tile(Ho, Wo, Cl, target_rows=8, acc_budget_bytes=512 * 1024):
    """Row tile: divisor of Ho, <= target_rows, f32 acc <= acc_budget_bytes."""
    by_budget = max(1, acc_budget_bytes // max(1, Wo * Cl * 4))
    t = max(1, min(target_rows, by_budget, Ho))
    while Ho % t != 0:
        t -= 1
    return t


def channelwise_conv(x, weight, stride=1):
    """ChannelWiseConv.forward: depthwise conv, padding=(K-1)//2, no bias.

    x:      (N, C, H, W)    NCHW, matching the PyTorch module
    weight: (Cout, 1, K, K) PyTorch grouped-conv weight with groups = C
    """
    N, C, H, W = x.shape
    Cout, cin_per_group, K, _ = weight.shape
    assert cin_per_group == 1, "groups must equal nIn (channel-wise conv)"
    pad = (K - 1) // 2
    Ho = (H + 2 * pad - K) // stride + 1
    Wo = (W + 2 * pad - K) // stride + 1

    if Cout != C:
        # TODO(synk): replicate channels inside the kernel (lane repeat) instead
        # of this HBM gather; the common CGNet config has nOut == nIn.
        reps = Cout // C
        assert reps * C == Cout
        x = x[:, jnp.arange(Cout) // reps, :, :]
    Cw = Cout

    # Fold G images' channels onto the lane axis for lane density.
    G = _pick_group(N, Cw)
    Nb = N // G
    Cl = G * Cw
    # (N, Cw, H, W) -> (Nb, G, Cw, H, W) -> (Nb, H, W, G, Cw) -> (Nb, H, W, Cl)
    xcl = jnp.transpose(x.reshape(Nb, G, Cw, H, W),
                        (0, 3, 4, 1, 2)).reshape(Nb, H, W, Cl)
    wcl = jnp.transpose(weight[:, 0, :, :], (1, 2, 0))      # (K, K, Cw)
    wcl = jnp.tile(wcl, (1, 1, G)).astype(weight.dtype)     # (K, K, Cl)

    tho = _pick_row_tile(Ho, Wo, Cl)
    n_h = Ho // tho
    TIN = (tho - 1) * stride + K                            # input rows / tile

    # VMEM accounting: only request a raised limit when actually needed, and
    # never the full v7x 64 MiB (leave headroom for compiler scratch / DMA).
    in_b = H * W * Cl * x.dtype.itemsize
    out_b = tho * Wo * Cl * x.dtype.itemsize
    w_b = K * K * Cl * wcl.dtype.itemsize
    sc_b = TIN * (W + 2 * pad) * Cl * x.dtype.itemsize
    vmem_need = 2 * in_b + 2 * out_b + 2 * w_b + sc_b + (1 << 20)
    vmem_limit = (None if vmem_need <= (32 << 20)
                  else int(min(vmem_need + (2 << 20), 48 << 20)))

    kern = functools.partial(_dwconv_kernel, K=K, stride=stride, pad=pad,
                             n_h=n_h)
    out = pl.pallas_call(
        kern,
        out_shape=jax.ShapeDtypeStruct((Nb, Ho, Wo, Cl), x.dtype),
        grid=(Nb, n_h),
        in_specs=[
            # Full image resident across the h axis (index map ignores h).
            pl.BlockSpec((1, H, W, Cl), lambda n, h: (n, 0, 0, 0)),
            pl.BlockSpec((K, K, Cl), lambda n, h: (0, 0, 0)),
        ],
        out_specs=pl.BlockSpec((1, tho, Wo, Cl), lambda n, h: (n, h, 0, 0)),
        scratch_shapes=[
            pltpu.VMEM((TIN, W + 2 * pad, Cl), x.dtype),    # input-dtype scratch
        ],
        compiler_params=pltpu.CompilerParams(
            dimension_semantics=("parallel", "parallel"),
            vmem_limit_bytes=vmem_limit,
        ),
    )(xcl, wcl)

    # (Nb, Ho, Wo, Cl) -> (Nb, Ho, Wo, G, Cw) -> (Nb, G, Cw, Ho, Wo) -> NCHW
    out = jnp.transpose(out.reshape(Nb, Ho, Wo, G, Cw),
                        (0, 3, 4, 1, 2)).reshape(N, Cw, Ho, Wo)
    return out


def _ref_channelwise_conv(x, weight, stride=1):
    """Pure-JAX reference (PyTorch Conv2d, groups=nIn, bias=False)."""
    K = weight.shape[2]
    pad = (K - 1) // 2
    return lax.conv_general_dilated(
        x, weight,
        window_strides=(stride, stride),
        padding=[(pad, pad), (pad, pad)],
        dimension_numbers=("NCHW", "OIHW", "NCHW"),
        feature_group_count=x.shape[1],
        precision=lax.Precision.HIGHEST,
    )


if __name__ == "__main__":
    key = jax.random.PRNGKey(0)
    N, C, H, W = 2, 4, 16, 16
    kSize = 3

    kx, kw = jax.random.split(key)
    x = jax.random.normal(kx, (N, C, H, W), dtype=jnp.float32)
    weight = jax.random.normal(kw, (C, 1, kSize, kSize), dtype=jnp.float32) * 0.1

    # stride=1 (module default)
    out = jax.block_until_ready(channelwise_conv(x, weight, stride=1))
    ref = _ref_channelwise_conv(x, weight, stride=1)
    assert out.shape == ref.shape
    assert jnp.allclose(out, ref, atol=1e-5, rtol=1e-5)

    # stride=2 path (ChannelWiseConv supports stride != 1)
    out2 = jax.block_until_ready(channelwise_conv(x, weight, stride=2))
    ref2 = _ref_channelwise_conv(x, weight, stride=2)
    assert out2.shape == ref2.shape
    assert jnp.allclose(out2, ref2, atol=1e-5, rtol=1e-5)

    print("KERNEL_OK")
</pallas_src>

<mosaic_0001>
module attributes {stable_mosaic.version = 11 : i64} {
  func.func @_dwconv_kernel(%arg0: i32, %arg1: i32, %arg2: memref<1x16x16x8xf32, #tpu.memory_space<vmem>>, %arg3: memref<3x3x8xf32, #tpu.memory_space<vmem>>, %arg4: memref<1x8x16x8xf32, #tpu.memory_space<vmem>>, %arg5: memref<10x18x8xf32, #tpu.memory_space<vmem>>) attributes {dimension_semantics = [#tpu.dimension_semantics<parallel>, #tpu.dimension_semantics<parallel>], iteration_bounds = array<i64: 1, 2>, scalar_prefetch = 0 : i64, scratch_operands = 1 : i64, tpu.core_type = #tpu.core_type<tc>, window_params = [{transform_indices = @transform_0, window_bounds = array<i64: 1, 16, 16, 8>}, {pipeline_mode = #tpu.pipeline_mode<synchronous>, transform_indices = @transform_1, window_bounds = array<i64: 3, 3, 8>}, {transform_indices = @transform_2, window_bounds = array<i64: 1, 8, 16, 8>}]} {
    %c8_i32 = arith.constant 8 : i32
    %0 = arith.muli %arg1, %c8_i32 : i32
    %c1_i32 = arith.constant 1 : i32
    %1 = arith.subi %0, %c1_i32 : i32
    %cst = arith.constant 0.000000e+00 : f32
    %2 = vector.broadcast %cst : f32 to vector<10x1x8xf32>
    %c0 = arith.constant 0 : index
    %c0_0 = arith.constant 0 : index
    %c0_1 = arith.constant 0 : index
    %3 = vector.load %arg5[%c0, %c0_0, %c0_1] : memref<10x18x8xf32, #tpu.memory_space<vmem>>, vector<10x1x8xf32>
    tpu.vector_store %arg5[%c0, %c0_0, %c0_1], %2 {strides = array<i32>} : memref<10x18x8xf32, #tpu.memory_space<vmem>>, vector<10x1x8xf32>,
    %c0_2 = arith.constant 0 : index
    %c17 = arith.constant 17 : index
    %c0_3 = arith.constant 0 : index
    %4 = vector.load %arg5[%c0_2, %c17, %c0_3] : memref<10x18x8xf32, #tpu.memory_space<vmem>>, vector<10x1x8xf32>
    tpu.vector_store %arg5[%c0_2, %c17, %c0_3], %2 {strides = array<i32>} : memref<10x18x8xf32, #tpu.memory_space<vmem>>, vector<10x1x8xf32>,
    %cst_4 = arith.constant 0.000000e+00 : f32
    %5 = vector.broadcast %cst_4 : f32 to vector<1x16x8xf32>
    %c0_i32 = arith.constant 0 : i32
    %6 = arith.addi %1, %c0_i32 : i32
    %c0_i32_5 = arith.constant 0 : i32
    %7 = arith.cmpi sge, %6, %c0_i32_5 : i32
    %c16_i32 = arith.constant 16 : i32
    %8 = arith.cmpi slt, %6, %c16_i32 : i32
    %9 = arith.andi %7, %8 : i1
    %c0_i32_6 = arith.constant 0 : i32
    %c15_i32 = arith.constant 15 : i32
    %10 = arith.maxsi %c0_i32_6, %6 : i32
    %11 = arith.minsi %c15_i32, %10 : i32
    %12 = arith.extui %9 : i1 to i32
    %c0_i32_7 = arith.constant 0 : i32
    %13 = arith.cmpi ne, %12, %c0_i32_7 : i32
    scf.if %13 {
      %c0_117 = arith.constant 0 : index
      %135 = arith.index_cast %11 : i32 to index
      %c0_118 = arith.constant 0 : index
      %c0_119 = arith.constant 0 : index
      %136 = vector.load %arg2[%c0_117, %135, %c0_118, %c0_119] : memref<1x16x16x8xf32, #tpu.memory_space<vmem>>, vector<1x1x16x8xf32>
      %137 = vector.shape_cast %136 : vector<1x1x16x8xf32> to vector<1x16x8xf32>
      %c0_120 = arith.constant 0 : index
      %c1_121 = arith.constant 1 : index
      %c0_122 = arith.constant 0 : index
      %138 = vector.load %arg5[%c0_120, %c1_121, %c0_122] : memref<10x18x8xf32, #tpu.memory_space<vmem>>, vector<1x16x8xf32>
      tpu.vector_store %arg5[%c0_120, %c1_121, %c0_122], %137 {strides = array<i32>} : memref<10x18x8xf32, #tpu.memory_space<vmem>>, vector<1x16x8xf32>,
    } else {
    }
    %true = arith.constant true
    %14 = arith.xori %9, %true : i1
    %15 = arith.extui %14 : i1 to i32
    %c0_i32_8 = arith.constant 0 : i32
    %16 = arith.cmpi ne, %15, %c0_i32_8 : i32
    scf.if %16 {
      %c0_117 = arith.constant 0 : index
      %c1_118 = arith.constant 1 : index
      %c0_119 = arith.constant 0 : index
      %135 = vector.load %arg5[%c0_117, %c1_118, %c0_119] : memref<10x18x8xf32, #tpu.memory_space<vmem>>, vector<1x16x8xf32>
      tpu.vector_store %arg5[%c0_117, %c1_118, %c0_119], %5 {strides = array<i32>} : memref<10x18x8xf32, #tpu.memory_space<vmem>>, vector<1x16x8xf32>,
    } else {
    }
    %c1_i32_9 = arith.constant 1 : i32
    %17 = arith.addi %1, %c1_i32_9 : i32
    %c0_10 = arith.constant 0 : index
    %18 = arith.index_cast %17 : i32 to index
    %c0_11 = arith.constant 0 : index
    %c0_12 = arith.constant 0 : index
    %19 = vector.load %arg2[%c0_10, %18, %c0_11, %c0_12] : memref<1x16x16x8xf32, #tpu.memory_space<vmem>>, vector<1x1x16x8xf32>
    %20 = vector.shape_cast %19 : vector<1x1x16x8xf32> to vector<1x16x8xf32>
    %c1 = arith.constant 1 : index
    %c1_13 = arith.constant 1 : index
    %c0_14 = arith.constant 0 : index
    %21 = vector.load %arg5[%c1, %c1_13, %c0_14] : memref<10x18x8xf32, #tpu.memory_space<vmem>>, vector<1x16x8xf32>
    tpu.vector_store %arg5[%c1, %c1_13, %c0_14], %20 {strides = array<i32>} : memref<10x18x8xf32, #tpu.memory_space<vmem>>, vector<1x16x8xf32>,
    %c2_i32 = arith.constant 2 : i32
    %22 = arith.addi %1, %c2_i32 : i32
    %c0_15 = arith.constant 0 : index
    %23 = arith.index_cast %22 : i32 to index
    %c0_16 = arith.constant 0 : index
    %c0_17 = arith.constant 0 : index
    %24 = vector.load %arg2[%c0_15, %23, %c0_16, %c0_17] : memref<1x16x16x8xf32, #tpu.memory_space<vmem>>, vector<1x1x16x8xf32>
    %25 = vector.shape_cast %24 : vector<1x1x16x8xf32> to vector<1x16x8xf32>
    %c2 = arith.constant 2 : index
    %c1_18 = arith.constant 1 : index
    %c0_19 = arith.constant 0 : index
    %26 = vector.load %arg5[%c2, %c1_18, %c0_19] : memref<10x18x8xf32, #tpu.memory_space<vmem>>, vector<1x16x8xf32>
    tpu.vector_store %arg5[%c2, %c1_18, %c0_19], %25 {strides = array<i32>} : memref<10x18x8xf32, #tpu.memory_space<vmem>>, vector<1x16x8xf32>,
    %c3_i32 = arith.constant 3 : i32
    %27 = arith.addi %1, %c3_i32 : i32
    %c0_20 = arith.constant 0 : index
    %28 = arith.index_cast %27 : i32 to index
    %c0_21 = arith.constant 0 : index
    %c0_22 = arith.constant 0 : index
    %29 = vector.load %arg2[%c0_20, %28, %c0_21, %c0_22] : memref<1x16x16x8xf32, #tpu.memory_space<vmem>>, vector<1x1x16x8xf32>
    %30 = vector.shape_cast %29 : vector<1x1x16x8xf32> to vector<1x16x8xf32>
    %c3 = arith.constant 3 : index
    %c1_23 = arith.constant 1 : index
    %c0_24 = arith.constant 0 : index
    %31 = vector.load %arg5[%c3, %c1_23, %c0_24] : memref<10x18x8xf32, #tpu.memory_space<vmem>>, vector<1x16x8xf32>
    tpu.vector_store %arg5[%c3, %c1_23, %c0_24], %30 {strides = array<i32>} : memref<10x18x8xf32, #tpu.memory_space<vmem>>, vector<1x16x8xf32>,
    %c4_i32 = arith.constant 4 : i32
    %32 = arith.addi %1, %c4_i32 : i32
    %c0_25 = arith.constant 0 : index
    %33 = arith.index_cast %32 : i32 to index
    %c0_26 = arith.constant 0 : index
    %c0_27 = arith.constant 0 : index
    %34 = vector.load %arg2[%c0_25, %33, %c0_26, %c0_27] : memref<1x16x16x8xf32, #tpu.memory_space<vmem>>, vector<1x1x16x8xf32>
    %35 = vector.shape_cast %34 : vector<1x1x16x8xf32> to vector<1x16x8xf32>
    %c4 = arith.constant 4 : index
    %c1_28 = arith.constant 1 : index
    %c0_29 = arith.constant 0 : index
    %36 = vector.load %arg5[%c4, %c1_28, %c0_29] : memref<10x18x8xf32, #tpu.memory_space<vmem>>, vector<1x16x8xf32>
    tpu.vector_store %arg5[%c4, %c1_28, %c0_29], %35 {strides = array<i32>} : memref<10x18x8xf32, #tpu.memory_space<vmem>>, vector<1x16x8xf32>,
    %c5_i32 = arith.constant 5 : i32
    %37 = arith.addi %1, %c5_i32 : i32
    %c0_30 = arith.constant 0 : index
    %38 = arith.index_cast %37 : i32 to index
    %c0_31 = arith.constant 0 : index
    %c0_32 = arith.constant 0 : index
    %39 = vector.load %arg2[%c0_30, %38, %c0_31, %c0_32] : memref<1x16x16x8xf32, #tpu.memory_space<vmem>>, vector<1x1x16x8xf32>
    %40 = vector.shape_cast %39 : vector<1x1x16x8xf32> to vector<1x16x8xf32>
    %c5 = arith.constant 5 : index
    %c1_33 = arith.constant 1 : index
    %c0_34 = arith.constant 0 : index
    %41 = vector.load %arg5[%c5, %c1_33, %c0_34] : memref<10x18x8xf32, #tpu.memory_space<vmem>>, vector<1x16x8xf32>
    tpu.vector_store %arg5[%c5, %c1_33, %c0_34], %40 {strides = array<i32>} : memref<10x18x8xf32, #tpu.memory_space<vmem>>, vector<1x16x8xf32>,
    %c6_i32 = arith.constant 6 : i32
    %42 = arith.addi %1, %c6_i32 : i32
    %c0_35 = arith.constant 0 : index
    %43 = arith.index_cast %42 : i32 to index
    %c0_36 = arith.constant 0 : index
    %c0_37 = arith.constant 0 : index
    %44 = vector.load %arg2[%c0_35, %43, %c0_36, %c0_37] : memref<1x16x16x8xf32, #tpu.memory_space<vmem>>, vector<1x1x16x8xf32>
    %45 = vector.shape_cast %44 : vector<1x1x16x8xf32> to vector<1x16x8xf32>
    %c6 = arith.constant 6 : index
    %c1_38 = arith.constant 1 : index
    %c0_39 = arith.constant 0 : index
    %46 = vector.load %arg5[%c6, %c1_38, %c0_39] : memref<10x18x8xf32, #tpu.memory_space<vmem>>, vector<1x16x8xf32>
    tpu.vector_store %arg5[%c6, %c1_38, %c0_39], %45 {strides = array<i32>} : memref<10x18x8xf32, #tpu.memory_space<vmem>>, vector<1x16x8xf32>,
    %c7_i32 = arith.constant 7 : i32
    %47 = arith.addi %1, %c7_i32 : i32
    %c0_40 = arith.constant 0 : index
    %48 = arith.index_cast %47 : i32 to index
    %c0_41 = arith.constant 0 : index
    %c0_42 = arith.constant 0 : index
    %49 = vector.load %arg2[%c0_40, %48, %c0_41, %c0_42] : memref<1x16x16x8xf32, #tpu.memory_space<vmem>>, vector<1x1x16x8xf32>
    %50 = vector.shape_cast %49 : vector<1x1x16x8xf32> to vector<1x16x8xf32>
    %c7 = arith.constant 7 : index
    %c1_43 = arith.constant 1 : index
    %c0_44 = arith.constant 0 : index
    %51 = vector.load %arg5[%c7, %c1_43, %c0_44] : memref<10x18x8xf32, #tpu.memory_space<vmem>>, vector<1x16x8xf32>
    tpu.vector_store %arg5[%c7, %c1_43, %c0_44], %50 {strides = array<i32>} : memref<10x18x8xf32, #tpu.memory_space<vmem>>, vector<1x16x8xf32>,
    %c8_i32_45 = arith.constant 8 : i32
    %52 = arith.addi %1, %c8_i32_45 : i32
    %c0_46 = arith.constant 0 : index
    %53 = arith.index_cast %52 : i32 to index
    %c0_47 = arith.constant 0 : index
    %c0_48 = arith.constant 0 : index
    %54 = vector.load %arg2[%c0_46, %53, %c0_47, %c0_48] : memref<1x16x16x8xf32, #tpu.memory_space<vmem>>, vector<1x1x16x8xf32>
    %55 = vector.shape_cast %54 : vector<1x1x16x8xf32> to vector<1x16x8xf32>
    %c8 = arith.constant 8 : index
    %c1_49 = arith.constant 1 : index
    %c0_50 = arith.constant 0 : index
    %56 = vector.load %arg5[%c8, %c1_49, %c0_50] : memref<10x18x8xf32, #tpu.memory_space<vmem>>, vector<1x16x8xf32>
    tpu.vector_store %arg5[%c8, %c1_49, %c0_50], %55 {strides = array<i32>} : memref<10x18x8xf32, #tpu.memory_space<vmem>>, vector<1x16x8xf32>,
    %c9_i32 = arith.constant 9 : i32
    %57 = arith.addi %1, %c9_i32 : i32
    %c0_i32_51 = arith.constant 0 : i32
    %58 = arith.cmpi sge, %57, %c0_i32_51 : i32
    %c16_i32_52 = arith.constant 16 : i32
    %59 = arith.cmpi slt, %57, %c16_i32_52 : i32
    %60 = arith.andi %58, %59 : i1
    %c0_i32_53 = arith.constant 0 : i32
    %c15_i32_54 = arith.constant 15 : i32
    %61 = arith.maxsi %c0_i32_53, %57 : i32
    %62 = arith.minsi %c15_i32_54, %61 : i32
    %63 = arith.extui %60 : i1 to i32
    %c0_i32_55 = arith.constant 0 : i32
    %64 = arith.cmpi ne, %63, %c0_i32_55 : i32
    scf.if %64 {
      %c0_117 = arith.constant 0 : index
      %135 = arith.index_cast %62 : i32 to index
      %c0_118 = arith.constant 0 : index
      %c0_119 = arith.constant 0 : index
      %136 = vector.load %arg2[%c0_117, %135, %c0_118, %c0_119] : memref<1x16x16x8xf32, #tpu.memory_space<vmem>>, vector<1x1x16x8xf32>
      %137 = vector.shape_cast %136 : vector<1x1x16x8xf32> to vector<1x16x8xf32>
      %c9 = arith.constant 9 : index
      %c1_120 = arith.constant 1 : index
      %c0_121 = arith.constant 0 : index
      %138 = vector.load %arg5[%c9, %c1_120, %c0_121] : memref<10x18x8xf32, #tpu.memory_space<vmem>>, vector<1x16x8xf32>
      tpu.vector_store %arg5[%c9, %c1_120, %c0_121], %137 {strides = array<i32>} : memref<10x18x8xf32, #tpu.memory_space<vmem>>, vector<1x16x8xf32>,
    } else {
    }
    %true_56 = arith.constant true
    %65 = arith.xori %60, %true_56 : i1
    %66 = arith.extui %65 : i1 to i32
    %c0_i32_57 = arith.constant 0 : i32
    %67 = arith.cmpi ne, %66, %c0_i32_57 : i32
    scf.if %67 {
      %c9 = arith.constant 9 : index
      %c1_117 = arith.constant 1 : index
      %c0_118 = arith.constant 0 : index
      %135 = vector.load %arg5[%c9, %c1_117, %c0_118] : memref<10x18x8xf32, #tpu.memory_space<vmem>>, vector<1x16x8xf32>
      tpu.vector_store %arg5[%c9, %c1_117, %c0_118], %5 {strides = array<i32>} : memref<10x18x8xf32, #tpu.memory_space<vmem>>, vector<1x16x8xf32>,
    } else {
    }
    %cst_58 = arith.constant 0.000000e+00 : f32
    %68 = vector.broadcast %cst_58 : f32 to vector<8x16x8xf32>
    %c0_59 = arith.constant 0 : index
    %c0_60 = arith.constant 0 : index
    %c0_61 = arith.constant 0 : index
    %69 = vector.load %arg5[%c0_59, %c0_60, %c0_61] : memref<10x18x8xf32, #tpu.memory_space<vmem>>, vector<8x16x8xf32>
    %c0_62 = arith.constant 0 : index
    %c0_63 = arith.constant 0 : index
    %c0_64 = arith.constant 0 : index
    %70 = vector.load %arg3[%c0_62, %c0_63, %c0_64] : memref<3x3x8xf32, #tpu.memory_space<vmem>>, vector<1x1x8xf32>
    %71 = vector.shape_cast %70 : vector<1x1x8xf32> to vector<8xf32>
    %72 = vector.shape_cast %71 : vector<8xf32> to vector<1x1x8xf32>
    %73 = vector.broadcast %72 : vector<1x1x8xf32> to vector<8x16x8xf32>
    %74 = arith.mulf %69, %73 : vector<8x16x8xf32>
    %75 = arith.addf %68, %74 : vector<8x16x8xf32>
    %c0_65 = arith.constant 0 : index
    %c1_66 = arith.constant 1 : index
    %c0_67 = arith.constant 0 : index
    %76 = vector.load %arg5[%c0_65, %c1_66, %c0_67] : memref<10x18x8xf32, #tpu.memory_space<vmem>>, vector<8x16x8xf32>
    %c0_68 = arith.constant 0 : index
    %c1_69 = arith.constant 1 : index
    %c0_70 = arith.constant 0 : index
    %77 = vector.load %arg3[%c0_68, %c1_69, %c0_70] : memref<3x3x8xf32, #tpu.memory_space<vmem>>, vector<1x1x8xf32>
    %78 = vector.shape_cast %77 : vector<1x1x8xf32> to vector<8xf32>
    %79 = vector.shape_cast %78 : vector<8xf32> to vector<1x1x8xf32>
    %80 = vector.broadcast %79 : vector<1x1x8xf32> to vector<8x16x8xf32>
    %81 = arith.mulf %76, %80 : vector<8x16x8xf32>
    %82 = arith.addf %75, %81 : vector<8x16x8xf32>
    %c0_71 = arith.constant 0 : index
    %c2_72 = arith.constant 2 : index
    %c0_73 = arith.constant 0 : index
    %83 = vector.load %arg5[%c0_71, %c2_72, %c0_73] : memref<10x18x8xf32, #tpu.memory_space<vmem>>, vector<8x16x8xf32>
    %c0_74 = arith.constant 0 : index
    %c2_75 = arith.constant 2 : index
    %c0_76 = arith.constant 0 : index
    %84 = vector.load %arg3[%c0_74, %c2_75, %c0_76] : memref<3x3x8xf32, #tpu.memory_space<vmem>>, vector<1x1x8xf32>
    %85 = vector.shape_cast %84 : vector<1x1x8xf32> to vector<8xf32>
    %86 = vector.shape_cast %85 : vector<8xf32> to vector<1x1x8xf32>
    %87 = vector.broadcast %86 : vector<1x1x8xf32> to vector<8x16x8xf32>
    %88 = arith.mulf %83, %87 : vector<8x16x8xf32>
    %89 = arith.addf %82, %88 : vector<8x16x8xf32>
    %c1_77 = arith.constant 1 : index
    %c0_78 = arith.constant 0 : index
    %c0_79 = arith.constant 0 : index
    %90 = vector.load %arg5[%c1_77, %c0_78, %c0_79] : memref<10x18x8xf32, #tpu.memory_space<vmem>>, vector<8x16x8xf32>
    %c1_80 = arith.constant 1 : index
    %c0_81 = arith.constant 0 : index
    %c0_82 = arith.constant 0 : index
    %91 = vector.load %arg3[%c1_80, %c0_81, %c0_82] : memref<3x3x8xf32, #tpu.memory_space<vmem>>, vector<1x1x8xf32>
    %92 = vector.shape_cast %91 : vector<1x1x8xf32> to vector<8xf32>
    %93 = vector.shape_cast %92 : vector<8xf32> to vector<1x1x8xf32>
    %94 = vector.broadcast %93 : vector<1x1x8xf32> to vector<8x16x8xf32>
    %95 = arith.mulf %90, %94 : vector<8x16x8xf32>
    %96 = arith.addf %89, %95 : vector<8x16x8xf32>
    %c1_83 = arith.constant 1 : index
    %c1_84 = arith.constant 1 : index
    %c0_85 = arith.constant 0 : index
    %97 = vector.load %arg5[%c1_83, %c1_84, %c0_85] : memref<10x18x8xf32, #tpu.memory_space<vmem>>, vector<8x16x8xf32>
    %c1_86 = arith.constant 1 : index
    %c1_87 = arith.constant 1 : index
    %c0_88 = arith.constant 0 : index
    %98 = vector.load %arg3[%c1_86, %c1_87, %c0_88] : memref<3x3x8xf32, #tpu.memory_space<vmem>>, vector<1x1x8xf32>
    %99 = vector.shape_cast %98 : vector<1x1x8xf32> to vector<8xf32>
    %100 = vector.shape_cast %99 : vector<8xf32> to vector<1x1x8xf32>
    %101 = vector.broadcast %100 : vector<1x1x8xf32> to vector<8x16x8xf32>
    %102 = arith.mulf %97, %101 : vector<8x16x8xf32>
    %103 = arith.addf %96, %102 : vector<8x16x8xf32>
    %c1_89 = arith.constant 1 : index
    %c2_90 = arith.constant 2 : index
    %c0_91 = arith.constant 0 : index
    %104 = vector.load %arg5[%c1_89, %c2_90, %c0_91] : memref<10x18x8xf32, #tpu.memory_space<vmem>>, vector<8x16x8xf32>
    %c1_92 = arith.constant 1 : index
    %c2_93 = arith.constant 2 : index
    %c0_94 = arith.constant 0 : index
    %105 = vector.load %arg3[%c1_92, %c2_93, %c0_94] : memref<3x3x8xf32, #tpu.memory_space<vmem>>, vector<1x1x8xf32>
    %106 = vector.shape_cast %105 : vector<1x1x8xf32> to vector<8xf32>
    %107 = vector.shape_cast %106 : vector<8xf32> to vector<1x1x8xf32>
    %108 = vector.broadcast %107 : vector<1x1x8xf32> to vector<8x16x8xf32>
    %109 = arith.mulf %104, %108 : vector<8x16x8xf32>
    %110 = arith.addf %103, %109 : vector<8x16x8xf32>
    %c2_95 = arith.constant 2 : index
    %c0_96 = arith.constant 0 : index
    %c0_97 = arith.constant 0 : index
    %111 = vector.load %arg5[%c2_95, %c0_96, %c0_97] : memref<10x18x8xf32, #tpu.memory_space<vmem>>, vector<8x16x8xf32>
    %c2_98 = arith.constant 2 : index
    %c0_99 = arith.constant 0 : index
    %c0_100 = arith.constant 0 : index
    %112 = vector.load %arg3[%c2_98, %c0_99, %c0_100] : memref<3x3x8xf32, #tpu.memory_space<vmem>>, vector<1x1x8xf32>
    %113 = vector.shape_cast %112 : vector<1x1x8xf32> to vector<8xf32>
    %114 = vector.shape_cast %113 : vector<8xf32> to vector<1x1x8xf32>
    %115 = vector.broadcast %114 : vector<1x1x8xf32> to vector<8x16x8xf32>
    %116 = arith.mulf %111, %115 : vector<8x16x8xf32>
    %117 = arith.addf %110, %116 : vector<8x16x8xf32>
    %c2_101 = arith.constant 2 : index
    %c1_102 = arith.constant 1 : index
    %c0_103 = arith.constant 0 : index
    %118 = vector.load %arg5[%c2_101, %c1_102, %c0_103] : memref<10x18x8xf32, #tpu.memory_space<vmem>>, vector<8x16x8xf32>
    %c2_104 = arith.constant 2 : index
    %c1_105 = arith.constant 1 : index
    %c0_106 = arith.constant 0 : index
    %119 = vector.load %arg3[%c2_104, %c1_105, %c0_106] : memref<3x3x8xf32, #tpu.memory_space<vmem>>, vector<1x1x8xf32>
    %120 = vector.shape_cast %119 : vector<1x1x8xf32> to vector<8xf32>
    %121 = vector.shape_cast %120 : vector<8xf32> to vector<1x1x8xf32>
    %122 = vector.broadcast %121 : vector<1x1x8xf32> to vector<8x16x8xf32>
    %123 = arith.mulf %118, %122 : vector<8x16x8xf32>
    %124 = arith.addf %117, %123 : vector<8x16x8xf32>
    %c2_107 = arith.constant 2 : index
    %c2_108 = arith.constant 2 : index
    %c0_109 = arith.constant 0 : index
    %125 = vector.load %arg5[%c2_107, %c2_108, %c0_109] : memref<10x18x8xf32, #tpu.memory_space<vmem>>, vector<8x16x8xf32>
    %c2_110 = arith.constant 2 : index
    %c2_111 = arith.constant 2 : index
    %c0_112 = arith.constant 0 : index
    %126 = vector.load %arg3[%c2_110, %c2_111, %c0_112] : memref<3x3x8xf32, #tpu.memory_space<vmem>>, vector<1x1x8xf32>
    %127 = vector.shape_cast %126 : vector<1x1x8xf32> to vector<8xf32>
    %128 = vector.shape_cast %127 : vector<8xf32> to vector<1x1x8xf32>
    %129 = vector.broadcast %128 : vector<1x1x8xf32> to vector<8x16x8xf32>
    %130 = arith.mulf %125, %129 : vector<8x16x8xf32>
    %131 = arith.addf %124, %130 : vector<8x16x8xf32>
    %c0_113 = arith.constant 0 : index
    %c0_114 = arith.constant 0 : index
    %c0_115 = arith.constant 0 : index
    %c0_116 = arith.constant 0 : index
    %132 = vector.load %arg4[%c0_113, %c0_114, %c0_115, %c0_116] : memref<1x8x16x8xf32, #tpu.memory_space<vmem>>, vector<1x8x16x8xf32>
    %133 = vector.shape_cast %132 : vector<1x8x16x8xf32> to vector<8x16x8xf32>
    %134 = vector.shape_cast %131 : vector<8x16x8xf32> to vector<1x8x16x8xf32>
    tpu.vector_store %arg4[%c0_113, %c0_114, %c0_115, %c0_116], %134 {strides = array<i32>} : memref<1x8x16x8xf32, #tpu.memory_space<vmem>>, vector<1x8x16x8xf32>,
    return
  }
  func.func @transform_0(%arg0: i32, %arg1: i32) -> (i32, i32, i32, i32) {
    %c0_i32 = arith.constant 0 : i32
    %c0_i32_0 = arith.constant 0 : i32
    %c0_i32_1 = arith.constant 0 : i32
    %c0_i32_2 = arith.constant 0 : i32
    return %arg0, %c0_i32, %c0_i32_0, %c0_i32_1 : i32, i32, i32, i32
  }
  func.func @transform_1(%arg0: i32, %arg1: i32) -> (i32, i32, i32) {
    %c0_i32 = arith.constant 0 : i32
    %c0_i32_0 = arith.constant 0 : i32
    %c0_i32_1 = arith.constant 0 : i32
    %c0_i32_2 = arith.constant 0 : i32
    return %c0_i32, %c0_i32_0, %c0_i32_1 : i32, i32, i32
  }
  func.func @transform_2(%arg0: i32, %arg1: i32) -> (i32, i32, i32, i32) {
    %c0_i32 = arith.constant 0 : i32
    %c0_i32_0 = arith.constant 0 : i32
    %c0_i32_1 = arith.constant 0 : i32
    return %arg0, %arg1, %c0_i32, %c0_i32_0 : i32, i32, i32, i32
  }
}

</mosaic_0001>

<bundles_post_ra>
// kernel: tpu_custom_call.1
= control target key start
LH: loop header
LB: loop body
LE: loop exit
PB: predicated region body
PF: predicated region fallthrough
CT: control target
= control target key end

     0   :  { %s1072_s9 = smov 0   ;;  %s1074_s10 = smov 0   ;;  %s1447_s0 = inlined_call_operand.vmem [shape: f32[1,16,16,8], index: 0, kind: input, shape index: {}]   ;;  %s1448_s1 = inlined_call_operand.vmem [shape: f32[3,3,8], index: 1, kind: input, shape index: {}]   ;;  %s1449_s2 = inlined_call_operand.vmem [shape: f32[1,16,16,8], index: 2, kind: output, shape index: {}]  }
   0x1   :  { %s1076_s11 = smov 0  }
   0x2 LB: > { %s21_s12 = sadd.s32 1, %s1048_s10  ;;  %p926_p0 = scmp.ge.s32.totalorder %s1052_s11, 1  ;;  %s1052_s11 = sphi %s1076_s11, %s12_s11   ;;  %s1048_s10 = sphi %s1074_s10, %s1453_s10   ;;  %s1044_s9 = sphi %s1072_s9, %s1452_s9  }
   0x3   : > { %p22_p1 = scmp.ge.s32.totalorder %s21_s12, 2  ;;  %p126_p2 = scmp.lt.s32.totalorder %s1052_s11, 3 }
   0x5   : > { %s1455_s12 = smov (%p22_p1, %s21_s12), 0  ;;  %p127_p3 = pnand %p926_p0, %p126_p2 }
   0x6   : > { %s1093_s13 = sshll.u32 (!%p127_p3), %s1044_s9, 3  ;;  %vm171_vm0 = vcmask (!%p127_p3), 57344   ;;  %v1054_v0 = vmov (!%p127_p3), 0.0  }
   0x7   : > { %130 = sbr.rel (%p127_p3) target bundleno = 130 (0x82), region = 28  ;;  %p161_p4 = scmp.lt.s32.totalorder (!%p127_p3), %s1093_s13, 15  ;;  %172 = vst.msk [vmem:[#allocation2] sm:$0x1] (!%p127_p3), %vm171_vm0, %v1054_v0  ;;  %173 = vst.msk [vmem:[#allocation2 + $0x18] sm:$0x1] (!%p127_p3), %vm171_vm0, %v1054_v0 }
   0x8   : > { %s1097_s14 = sadd.s32 (!%p127_p3), 4294967295, %s1093_s13  ;;  %174 = vst.msk [vmem:[#allocation2 + $0x30] sm:$0x1] (!%p127_p3), %vm171_vm0, %v1054_v0  ;;  %175 = vst.msk [vmem:[#allocation2 + $0x48] sm:$0x1] (!%p127_p3), %vm171_vm0, %v1054_v0 }
   0x9   : > { %176 = vst.msk [vmem:[#allocation2 + $0x60] sm:$0x1] (!%p127_p3), %vm171_vm0, %v1054_v0  ;;  %177 = vst.msk [vmem:[#allocation2 + $0x78] sm:$0x1] (!%p127_p3), %vm171_vm0, %v1054_v0  ;;  %p192_p5 = scmp.ge.s32.totalorder (!%p127_p3), %s1097_s14, 0  ;;  %p193_p6 = scmp.lt.s32.totalorder (!%p127_p3), %s1097_s14, 16 }
   0xa   : > { %178 = vst.msk [vmem:[#allocation2 + $0x90] sm:$0x1] (!%p127_p3), %vm171_vm0, %v1054_v0  ;;  %179 = vst.msk [vmem:[#allocation2 + $0xa8] sm:$0x1] (!%p127_p3), %vm171_vm0, %v1054_v0  ;;  %p196_p8 = scmp.gt.s32.totalorder (!%p127_p3), %s1097_s14, 0  ;;  %p932_p9 = scmp.lt.s32.totalorder (!%p127_p3), %s1097_s14, 15 }
   0xb   : > { %180 = vst.msk [vmem:[#allocation2 + $0xc0] sm:$0x1] (!%p127_p3), %vm171_vm0, %v1054_v0  ;;  %181 = vst.msk [vmem:[#allocation2 + $0xd8] sm:$0x1] (!%p127_p3), %vm171_vm0, %v1054_v0  ;;  %p1124_p7 = pnand (!%p127_p3), %p193_p6, %p192_p5 }
   0xc   : > { %182 = vst.msk [vmem:[#allocation2 + $0x11] sm:$0x1] (!%p127_p3), %vm171_vm0, %v1054_v0  ;;  %183 = vst.msk [vmem:[#allocation2 + $0x29] sm:$0x1] (!%p127_p3), %vm171_vm0, %v1054_v0 }
   0xd   : > { %184 = vst.msk [vmem:[#allocation2 + $0x41] sm:$0x1] (!%p127_p3), %vm171_vm0, %v1054_v0  ;;  %185 = vst.msk [vmem:[#allocation2 + $0x59] sm:$0x1] (!%p127_p3), %vm171_vm0, %v1054_v0 }
   0xe   : > { %186 = vst.msk [vmem:[#allocation2 + $0x71] sm:$0x1] %vm171_vm0, %v1054_v0  ;;  %187 = vst.msk [vmem:[#allocation2 + $0x89] sm:$0x1] %vm171_vm0, %v1054_v0  ;;  %s162_s15 = scalar_select %p161_p4, %s1093_s13, 15 }
   0xf   : > { %188 = vst.msk [vmem:[#allocation2 + $0xa1] sm:$0x1] %vm171_vm0, %v1054_v0  ;;  %189 = vst.msk [vmem:[#allocation2 + $0xb9] sm:$0x1] %vm171_vm0, %v1054_v0  ;;  %s1457_s14 = smov (!%p196_p8, %s1097_s14), 0  ;;  %201 = sbr.rel (%p1124_p7) target bundleno = 22 (0x16), region = 32 }
  0x10   : > { %190 = vst.msk [vmem:[#allocation2 + $0xd1] sm:$0x1] %vm171_vm0, %v1054_v0  ;;  %191 = vst.msk [vmem:[#allocation2 + $0xe9] sm:$0x1] %vm171_vm0, %v1054_v0  ;;  %s990_s17 = sshll.u32 %s162_s15, 4  ;;  %s1459_s14 = smov (!%p932_p9, %s1457_s14), 15 }
  0x11   : > { %s1133_s20 = scalar_lea.vmem %s1449_s2, %s990_s17  ;;  %s937_s21 = sshll.u32 (!%p1124_p7), %s1459_s14, 4  ;;  %vm206_vm1 = vcmask (!%p1124_p7), 64512  }
  0x12   : > { %s203_s24 = scalar_lea.vmem (!%p1124_p7), %s1447_s0, %s937_s21 }
  0x13   : > { %v204_v1 = vld [vmem:[%s203_s24] sm:$0xff] (!%p1124_p7)  ;;  %v205_v2 = vld [vmem:[%s203_s24 + $0x8] sm:$0xff] (!%p1124_p7) }
  0x14   : > { %207 = vst.msk [vmem:[#allocation2 + $0x1] sm:$0xff] (!%p1124_p7), %vm206_vm1, %v204_v1  ;;  %208 = vst.msk [vmem:[#allocation2 + $0x9] sm:$0xff] (!%p1124_p7), %vm206_vm1, %v205_v2 }
  0x16 PF: > { %211 = sbr.rel (!%p1124_p7) target bundleno = 29 (0x1d), region = 36  ;;  %vm212_vm2 = vcmask (%p1124_p7), 64512   ;;  %v1055_v3 = vmov (%p1124_p7), 0.0  }
  0x17   : > { %213 = vst.msk [vmem:[#allocation2 + $0x1] sm:$0xff] (%p1124_p7), %vm212_vm2, %v1055_v3  ;;  %214 = vst.msk [vmem:[#allocation2 + $0x9] sm:$0xff] (%p1124_p7), %vm212_vm2, %v1055_v3 }
  0x1d PF: > { %s993_s25 = sshll.u32 %s1044_s9, 7  ;;  %vm220_vm3 = vcmask 64512   ;;  %s1145_s26 = sadd.s32 8, %s1093_s13 }
  0x1e   : > { %s1150_s29 = scalar_lea.vmem %s1447_s0, %s993_s25  ;;  %p280_p10 = scmp.ge.s32.totalorder %s1145_s26, 0 }
  0x1f   : > { %v217_v4 = vld [vmem:[%s1150_s29] sm:$0xff]  ;;  %v218_v5 = vld [vmem:[%s1150_s29 + $0x8] sm:$0xff]  ;;  %v941_v6 = vld [vmem:[%s1150_s29 + $0x10] sm:$0xff]  ;;  %p281_p11 = scmp.lt.s32.totalorder %s1145_s26, 16  ;;  %p284_p12 = scmp.gt.s32.totalorder %s1145_s26, 0 }
  0x20   : > { %221 = vst.msk [vmem:[#allocation2 + $0x19] sm:$0xff] %vm220_vm3, %v217_v4  ;;  %222 = vst.msk [vmem:[#allocation2 + $0x21] sm:$0xff] %vm220_vm3, %v218_v5  ;;  %v942_v7 = vld [vmem:[%s1150_s29 + $0x18] sm:$0xff]  ;;  %v945_v8 = vld [vmem:[%s1150_s29 + $0x20] sm:$0xff]  ;;  %p967_p13 = scmp.lt.s32.totalorder %s1145_s26, 15 }
  0x21   : > { %229 = vst.msk [vmem:[#allocation2 + $0x31] sm:$0xff] %vm220_vm3, %v941_v6  ;;  %v946_v9 = vld [vmem:[%s1150_s29 + $0x28] sm:$0xff]  ;;  %230 = vst.msk [vmem:[#allocation2 + $0x39] sm:$0xff] %vm220_vm3, %v942_v7  ;;  %v949_v10 = vld [vmem:[%s1150_s29 + $0x30] sm:$0xff]  ;;  %p1175_p0 = pnand %p281_p11, %p280_p10 }
  0x22   : > { %237 = vst.msk [vmem:[#allocation2 + $0x49] sm:$0xff] %vm220_vm3, %v945_v8  ;;  %238 = vst.msk [vmem:[#allocation2 + $0x51] sm:$0xff] %vm220_vm3, %v946_v9  ;;  %v950_v11 = vld [vmem:[%s1150_s29 + $0x38] sm:$0xff]  ;;  %v953_v12 = vld [vmem:[%s1150_s29 + $0x40] sm:$0xff]  ;;  %s285_s3 = scalar_select %p284_p12, %s1145_s26, 0 }
  0x23   : > { %245 = vst.msk [vmem:[#allocation2 + $0x61] sm:$0xff] %vm220_vm3, %v949_v10  ;;  %246 = vst.msk [vmem:[#allocation2 + $0x69] sm:$0xff] %vm220_vm3, %v950_v11  ;;  %v954_v13 = vld [vmem:[%s1150_s29 + $0x48] sm:$0xff]  ;;  %v957_v14 = vld [vmem:[%s1150_s29 + $0x50] sm:$0xff]  ;;  %289 = sbr.rel (%p1175_p0) target bundleno = 42 (0x2a), region = 40 }
  0x24   : > { %253 = vst.msk [vmem:[#allocation2 + $0x79] sm:$0xff] %vm220_vm3, %v953_v12  ;;  %v958_v15 = vld [vmem:[%s1150_s29 + $0x58] sm:$0xff]  ;;  %254 = vst.msk [vmem:[#allocation2 + $0x81] sm:$0xff] %vm220_vm3, %v954_v13  ;;  %v961_v16 = vld [vmem:[%s1150_s29 + $0x60] sm:$0xff]  ;;  %s1461_s3 = smov (!%p967_p13, %s285_s3), 15 }
  0x25   : > { %261 = vst.msk [vmem:[#allocation2 + $0x91] sm:$0xff] %vm220_vm3, %v957_v14  ;;  %262 = vst.msk [vmem:[#allocation2 + $0x99] sm:$0xff] %vm220_vm3, %v958_v15  ;;  %v962_v17 = vld [vmem:[%s1150_s29 + $0x68] sm:$0xff]  ;;  %v965_v18 = vld [vmem:[%s1150_s29 + $0x70] sm:$0xff]  ;;  %s972_s4 = sshll.u32 (!%p1175_p0), %s1461_s3, 4 }
  0x26   : > { %269 = vst.msk [vmem:[#allocation2 + $0xa9] sm:$0xff] %vm220_vm3, %v961_v16  ;;  %270 = vst.msk [vmem:[#allocation2 + $0xb1] sm:$0xff] %vm220_vm3, %v962_v17  ;;  %v966_v19 = vld [vmem:[%s1150_s29 + $0x78] sm:$0xff]  ;;  %s291_s7 = scalar_lea.vmem (!%p1175_p0), %s1447_s0, %s972_s4 }
  0x27   : > { %277 = vst.msk [vmem:[#allocation2 + $0xc1] sm:$0xff] %vm220_vm3, %v965_v18  ;;  %278 = vst.msk [vmem:[#allocation2 + $0xc9] sm:$0xff] %vm220_vm3, %v966_v19  ;;  %v292_v20 = vld [vmem:[%s291_s7] sm:$0xff] (!%p1175_p0)  ;;  %v293_v21 = vld [vmem:[%s291_s7 + $0x8] sm:$0xff] (!%p1175_p0) }
  0x28   : > { %295 = vst.msk [vmem:[#allocation2 + $0xd9] sm:$0xff] (!%p1175_p0), %vm220_vm3, %v292_v20  ;;  %296 = vst.msk [vmem:[#allocation2 + $0xe1] sm:$0xff] (!%p1175_p0), %vm220_vm3, %v293_v21 }
  0x2a PF: > { %299 = sbr.rel (!%p1175_p0) target bundleno = 49 (0x31), region = 44  ;;  %v1056_v22 = vmov (%p1175_p0), 0.0  }
  0x2b   : > { %301 = vst.msk [vmem:[#allocation2 + $0xd9] sm:$0xff] (%p1175_p0), %vm220_vm3, %v1056_v22  ;;  %302 = vst.msk [vmem:[#allocation2 + $0xe1] sm:$0xff] (%p1175_p0), %vm220_vm3, %v1056_v22 }
  0x31 PF: > { %v303_v23 = vld [vmem:[#allocation2] sm:$0xff]  ;;  %v462_v32 = vld [vmem:[#allocation2 + $0x18] sm:$0xff]  ;;  %v622_v42 = vld [vmem:[#allocation2 + $0x30] sm:$0xff] }
  0x32   : > { %v1215_v24 = vld [vmem:[%s1448_s1] ss:$0 sm:$0xff]  ;;  %v356_v25 = vld [vmem:[#allocation2 + $0x1] sm:$0xff]  ;;  %v1257_v45 = vld [vmem:[%s1448_s1 + $0x9] ss:$0 sm:$0xff] }
  0x33   : > { %v324_v26 = vmul.f32 %v1215_v24, %v303_v23  ;;  %v1221_v27 = vld [vmem:[%s1448_s1 + $0x1] ss:$0 sm:$0xff]  ;;  %v409_v28 = vld [vmem:[#allocation2 + $0x2] sm:$0xff]  ;;  %v516_v34 = vld [vmem:[#allocation2 + $0x19] sm:$0xff]  ;;  %v326_v38 = vmul.f32 %v1215_v24, %v462_v32 }
  0x34   : > { %v1226_v29 = vld [vmem:[%s1448_s1 + $0x2] ss:$0 sm:$0xff]  ;;  %v377_v30 = vmul.f32 %v1221_v27, %v356_v25  ;;  %v1233_v33 = vld [vmem:[%s1448_s1 + $0x4] ss:$0 sm:$0xff]  ;;  %v1238_v35 = vld [vmem:[%s1448_s1 + $0x5] ss:$0 sm:$0xff]  ;;  %v379_v39 = vmul.f32 %v1221_v27, %v516_v34 }
  0x35   : > { %v430_v31 = vmul.f32 %v1226_v29, %v409_v28  ;;  %v569_v36 = vld [vmem:[#allocation2 + $0x1a] sm:$0xff]  ;;  %v1243_v37 = vld [vmem:[%s1448_s1 + $0x6] ss:$0 sm:$0xff]  ;;  %v484_v41 = vmul.f32 %v1233_v33, %v462_v32  ;;  %v1252_v44 = vld [vmem:[%s1448_s1 + $0x8] ss:$0 sm:$0xff]  ;;  %v537_v49 = vmul.f32 %v1238_v35, %v516_v34  ;;  %v486_v54 = vmul.f32 %v1233_v33, %v622_v42 }
  0x36   : > { %v393_v40 = vadd.f32 %v377_v30, %v324_v26  ;;  %v432_v43 = vmul.f32 %v1226_v29, %v569_v36  ;;  %v1262_v46 = vld [vmem:[%s1448_s1 + $0xa] ss:$0 sm:$0xff]  ;;  %v395_v47 = vadd.f32 %v379_v39, %v326_v38  ;;  %v590_v50 = vmul.f32 %v1243_v37, %v569_v36  ;;  %v676_v55 = vld [vmem:[#allocation2 + $0x31] sm:$0xff]  ;;  %v463_v0 = vld [vmem:[#allocation2 + $0x20] sm:$0xff] }
  0x37   : > { %v304_v51 = vld [vmem:[#allocation2 + $0x8] sm:$0xff]  ;;  %v644_v61 = vmul.f32 %v1252_v44, %v622_v42  ;;  %v697_v62 = vmul.f32 %v1257_v45, %v676_v55  ;;  %v729_v63 = vld [vmem:[#allocation2 + $0x32] sm:$0xff]  ;;  %v539_v2 = vmul.f32 %v1238_v35, %v676_v55  ;;  %v485_v5 = vmul.f32 %v1233_v33, %v463_v0 }
  0x38   : > { %v446_v48 = vadd.f32 %v430_v31, %v393_v40  ;;  %v357_v52 = vld [vmem:[#allocation2 + $0x9] sm:$0xff]  ;;  %v325_v56 = vmul.f32 %v1215_v24, %v304_v51  ;;  %v448_v59 = vadd.f32 %v432_v43, %v395_v47  ;;  %v517_v1 = vld [vmem:[#allocation2 + $0x21] sm:$0xff]  ;;  %v750_v3 = vmul.f32 %v1262_v46, %v729_v63  ;;  %v623_v11 = vld [vmem:[#allocation2 + $0x38] sm:$0xff] }
  0x39   : > { %v410_v53 = vld [vmem:[#allocation2 + $0xa] sm:$0xff]  ;;  %v378_v57 = vmul.f32 %v1221_v27, %v357_v52  ;;  %v570_v6 = vld [vmem:[#allocation2 + $0x22] sm:$0xff]  ;;  %v592_v7 = vmul.f32 %v1243_v37, %v729_v63  ;;  %v538_v9 = vmul.f32 %v1238_v35, %v517_v1  ;;  %v645_v14 = vmul.f32 %v1252_v44, %v623_v11  ;;  %v677_v19 = vld [vmem:[#allocation2 + $0x39] sm:$0xff] }
  0x3a   : > { %v431_v58 = vmul.f32 %v1226_v29, %v410_v53  ;;  %v500_v60 = vadd.f32 %v484_v41, %v446_v48  ;;  %v591_v10 = vmul.f32 %v1243_v37, %v570_v6  ;;  %v502_v12 = vadd.f32 %v486_v54, %v448_v59  ;;  %v1279_v15 = vld [vmem:[#allocation2 + $0x48] sm:$0xff]  ;;  %v730_v48 = vld [vmem:[#allocation2 + $0x3a] sm:$0xff]  ;;  %v625_v59 = vld [vmem:[#allocation2 + $0x50] sm:$0xff] }
  0x3b   : > { %v394_v4 = vadd.f32 %v378_v57, %v325_v56  ;;  %v327_v16 = vmul.f32 %v1215_v24, %v463_v0  ;;  %v380_v17 = vmul.f32 %v1221_v27, %v517_v1  ;;  %v646_v21 = vmul.f32 %v1252_v44, %v1279_v15  ;;  %v678_v26 = vld [vmem:[#allocation2 + $0x49] sm:$0xff] }
  0x3c   : > { %v553_v8 = vadd.f32 %v537_v49, %v500_v60  ;;  %v555_v20 = vadd.f32 %v539_v2, %v502_v12  ;;  %v433_v22 = vmul.f32 %v1226_v29, %v570_v6  ;;  %v698_v25 = vmul.f32 %v1257_v45, %v677_v19  ;;  %v731_v28 = vld [vmem:[#allocation2 + $0x4a] sm:$0xff] }
  0x3d   : > { %v447_v13 = vadd.f32 %v431_v58, %v394_v4  ;;  %v396_v30 = vadd.f32 %v380_v17, %v327_v16  ;;  %v487_v31 = vmul.f32 %v1233_v33, %v623_v11  ;;  %v699_v36 = vmul.f32 %v1257_v45, %v678_v26  ;;  %v679_v60 = vld [vmem:[#allocation2 + $0x51] sm:$0xff]  ;;  %v626_v17 = vld [vmem:[#allocation2 + $0x60] sm:$0xff] }
  0x3e   : > { %v606_v18 = vadd.f32 %v590_v50, %v553_v8  ;;  %v608_v34 = vadd.f32 %v592_v7, %v555_v20  ;;  %v752_v38 = vmul.f32 %v1262_v46, %v731_v28  ;;  %v540_v41 = vmul.f32 %v1238_v35, %v677_v19  ;;  %v732_v7 = vld [vmem:[#allocation2 + $0x52] sm:$0xff] }
  0x3f   : > { %v501_v23 = vadd.f32 %v485_v5, %v447_v13  ;;  %v449_v40 = vadd.f32 %v433_v22, %v396_v30  ;;  %v328_v43 = vmul.f32 %v1215_v24, %v622_v42  ;;  %v381_v50 = vmul.f32 %v1221_v27, %v676_v55  ;;  %v733_v30 = vld [vmem:[#allocation2 + $0x62] sm:$0xff] }
  0x40   : > { %v660_v32 = vadd.f32 %v644_v61, %v606_v18  ;;  %v662_v49 = vadd.f32 %v646_v21, %v608_v34  ;;  %v434_v51 = vmul.f32 %v1226_v29, %v729_v63  ;;  %v751_v53 = vmul.f32 %v1262_v46, %v730_v48 }
  0x41   : > { %v554_v39 = vadd.f32 %v538_v9, %v501_v23  ;;  %v503_v54 = vadd.f32 %v487_v31, %v449_v40  ;;  %v593_v56 = vmul.f32 %v1243_v37, %v730_v48  ;;  %v397_v61 = vadd.f32 %v381_v50, %v328_v43  ;;  %v627_v43 = vld [vmem:[#allocation2 + $0x68] sm:$0xff] }
  0x42   : > { %v713_v47 = vadd.f32 %v697_v62, %v660_v32  ;;  %v715_v58 = vadd.f32 %v699_v36, %v662_v49  ;;  %v488_v42 = vmul.f32 %v1233_v33, %v1279_v15  ;;  %v647_v0 = vmul.f32 %v1252_v44, %v625_v59 }
  0x43   : > { %v607_v52 = vadd.f32 %v591_v10, %v554_v39  ;;  %v556_v55 = vadd.f32 %v540_v41, %v503_v54  ;;  %v700_v63 = vmul.f32 %v1257_v45, %v679_v60  ;;  %v450_v2 = vadd.f32 %v434_v51, %v397_v61 }
  0x44   : > { %v766_v57 = vadd.f32 %v750_v3, %v713_v47  ;;  %v768_v1 = vadd.f32 %v752_v38, %v715_v58  ;;  %v541_v3 = vmul.f32 %v1238_v35, %v678_v26  ;;  %v329_v4 = vmul.f32 %v1215_v24, %v623_v11 }
  0x45   : > { %v661_v62 = vadd.f32 %v645_v14, %v607_v52  ;;  %v609_v6 = vadd.f32 %v593_v56, %v556_v55  ;;  %v382_v8 = vmul.f32 %v1221_v27, %v677_v19  ;;  %v435_v9 = vmul.f32 %v1226_v29, %v730_v48  ;;  %v681_v52 = vld [vmem:[#allocation2 + $0x69] sm:$0xff] }
  0x46   : > { %782 = vst.msk [vmem:[%s1133_s20] sm:$0xff] %vm220_vm3, %v766_v57  ;;  %784 = vst.msk [vmem:[%s1133_s20 + $0x10] sm:$0xff] %vm220_vm3, %v768_v1  ;;  %v753_v10 = vmul.f32 %v1262_v46, %v732_v7  ;;  %v504_v12 = vadd.f32 %v488_v42, %v450_v2  ;;  %v594_v13 = vmul.f32 %v1243_v37, %v731_v28 }
  0x47   : > { %v714_v5 = vadd.f32 %v698_v25, %v661_v62  ;;  %v663_v16 = vadd.f32 %v647_v0, %v609_v6  ;;  %v398_v18 = vadd.f32 %v382_v8, %v329_v4  ;;  %v489_v11 = vmul.f32 %v1233_v33, %v625_v59  ;;  %v680_v25 = vld [vmem:[#allocation2 + $0x61] sm:$0xff]  ;;  %v628_v0 = vld [vmem:[#allocation2 + $0x78] sm:$0xff] }
  0x48   : > { %v557_v20 = vadd.f32 %v541_v3, %v504_v12  ;;  %v648_v21 = vmul.f32 %v1252_v44, %v626_v17  ;;  %v542_v19 = vmul.f32 %v1238_v35, %v679_v60  ;;  %v330_v22 = vmul.f32 %v1215_v24, %v1279_v15 }
  0x49   : > { %v767_v14 = vadd.f32 %v751_v53, %v714_v5  ;;  %v716_v23 = vadd.f32 %v700_v63, %v663_v16  ;;  %v451_v31 = vadd.f32 %v435_v9, %v398_v18  ;;  %v383_v32 = vmul.f32 %v1221_v27, %v678_v26  ;;  %v734_v53 = vld [vmem:[#allocation2 + $0x6a] sm:$0xff] }
  0x4a   : > { %v436_v34 = vmul.f32 %v1226_v29, %v731_v28  ;;  %v610_v36 = vadd.f32 %v594_v13, %v557_v20  ;;  %v701_v38 = vmul.f32 %v1257_v45, %v680_v25  ;;  %v754_v39 = vmul.f32 %v1262_v46, %v733_v30  ;;  %v629_v20 = vld [vmem:[#allocation2 + $0x80] sm:$0xff] }
  0x4b   : > { %783 = vst.msk [vmem:[%s1133_s20 + $0x8] sm:$0xff] %vm220_vm3, %v767_v14  ;;  %v595_v40 = vmul.f32 %v1243_v37, %v732_v7  ;;  %v769_v41 = vadd.f32 %v753_v10, %v716_v23  ;;  %v505_v15 = vadd.f32 %v489_v11, %v451_v31  ;;  %v399_v47 = vadd.f32 %v383_v32, %v330_v22  ;;  %v735_v11 = vld [vmem:[#allocation2 + $0x7a] sm:$0xff] }
  0x4c   : > { %v490_v48 = vmul.f32 %v1233_v33, %v626_v17  ;;  %v664_v49 = vadd.f32 %v648_v21, %v610_v36  ;;  %v649_v50 = vmul.f32 %v1252_v44, %v627_v43  ;;  %v543_v26 = vmul.f32 %v1238_v35, %v680_v25  ;;  %v736_v36 = vld [vmem:[#allocation2 + $0x82] sm:$0xff] }
  0x4d   : > { %v331_v28 = vmul.f32 %v1215_v24, %v625_v59  ;;  %785 = vst.msk [vmem:[%s1133_s20 + $0x18] sm:$0xff] %vm220_vm3, %v769_v41  ;;  %v558_v51 = vadd.f32 %v542_v19, %v505_v15  ;;  %v452_v54 = vadd.f32 %v436_v34, %v399_v47  ;;  %v384_v56 = vmul.f32 %v1221_v27, %v679_v60  ;;  %v683_v34 = vld [vmem:[#allocation2 + $0x81] sm:$0xff] }
  0x4e   : > { %v437_v57 = vmul.f32 %v1226_v29, %v732_v7  ;;  %v717_v58 = vadd.f32 %v701_v38, %v664_v49  ;;  %v702_v61 = vmul.f32 %v1257_v45, %v681_v52  ;;  %v755_v42 = vmul.f32 %v1262_v46, %v734_v53  ;;  %v682_v7 = vld [vmem:[#allocation2 + $0x79] sm:$0xff] }
  0x4f   : > { %v596_v62 = vmul.f32 %v1243_v37, %v733_v30  ;;  %v611_v55 = vadd.f32 %v595_v40, %v558_v51  ;;  %v506_v59 = vadd.f32 %v490_v48, %v452_v54  ;;  %v400_v63 = vadd.f32 %v384_v56, %v331_v28 }
  0x50   : > { %v491_v1 = vmul.f32 %v1233_v33, %v627_v43  ;;  %v770_v2 = vadd.f32 %v754_v39, %v717_v58  ;;  %v650_v3 = vmul.f32 %v1252_v44, %v628_v0  ;;  %v544_v60 = vmul.f32 %v1238_v35, %v681_v52 }
  0x51   : > { %v332_v4 = vmul.f32 %v1215_v24, %v626_v17  ;;  %v665_v5 = vadd.f32 %v649_v50, %v611_v55  ;;  %v559_v6 = vadd.f32 %v543_v26, %v506_v59  ;;  %v453_v8 = vadd.f32 %v437_v57, %v400_v63  ;;  %v630_v50 = vld [vmem:[#allocation2 + $0x90] sm:$0xff] }
  0x52   : > { %v385_v9 = vmul.f32 %v1221_v27, %v680_v25  ;;  %786 = vst.msk [vmem:[%s1133_s20 + $0x20] sm:$0xff] %vm220_vm3, %v770_v2  ;;  %v703_v10 = vmul.f32 %v1257_v45, %v682_v7  ;;  %v597_v12 = vmul.f32 %v1243_v37, %v734_v53  ;;  %v438_v13 = vmul.f32 %v1226_v29, %v733_v30  ;;  %v684_v26 = vld [vmem:[#allocation2 + $0x91] sm:$0xff] }
  0x53   : > { %v492_v14 = vmul.f32 %v1233_v33, %v628_v0  ;;  %v718_v16 = vadd.f32 %v702_v61, %v665_v5  ;;  %v612_v18 = vadd.f32 %v596_v62, %v559_v6  ;;  %v507_v17 = vadd.f32 %v491_v1, %v453_v8  ;;  %v737_v61 = vld [vmem:[#allocation2 + $0x92] sm:$0xff] }
  0x54   : > { %v401_v21 = vadd.f32 %v385_v9, %v332_v4  ;;  %v756_v19 = vmul.f32 %v1262_v46, %v735_v11  ;;  %v651_v22 = vmul.f32 %v1252_v44, %v629_v20  ;;  %v545_v23 = vmul.f32 %v1238_v35, %v682_v7 }
  0x55   : > { %v333_v25 = vmul.f32 %v1215_v24, %v627_v43  ;;  %v771_v31 = vadd.f32 %v755_v42, %v718_v16  ;;  %v666_v32 = vadd.f32 %v650_v3, %v612_v18  ;;  %v560_v30 = vadd.f32 %v544_v60, %v507_v17  ;;  %v631_v60 = vld [vmem:[#allocation2 + $0x98] sm:$0xff] }
  0x56   : > { %v454_v38 = vadd.f32 %v438_v13, %v401_v21  ;;  %v704_v39 = vmul.f32 %v1257_v45, %v683_v34  ;;  %v757_v40 = vmul.f32 %v1262_v46, %v736_v36  ;;  %v386_v41 = vmul.f32 %v1221_v27, %v681_v52  ;;  %v685_v13 = vld [vmem:[#allocation2 + $0x99] sm:$0xff] }
  0x57   : > { %v439_v15 = vmul.f32 %v1226_v29, %v734_v53  ;;  %787 = vst.msk [vmem:[%s1133_s20 + $0x28] sm:$0xff] %vm220_vm3, %v771_v31  ;;  %v719_v47 = vadd.f32 %v703_v10, %v666_v32  ;;  %v613_v48 = vadd.f32 %v597_v12, %v560_v30  ;;  %v598_v43 = vmul.f32 %v1243_v37, %v735_v11 }
  0x58   : > { %v508_v49 = vadd.f32 %v492_v14, %v454_v38  ;;  %v652_v28 = vmul.f32 %v1252_v44, %v630_v50  ;;  %v705_v51 = vmul.f32 %v1257_v45, %v684_v26  ;;  %v402_v54 = vadd.f32 %v386_v41, %v333_v25  ;;  %v738_v14 = vld [vmem:[#allocation2 + $0x9a] sm:$0xff]  ;;  %v632_v25 = vld [vmem:[#allocation2 + $0xa8] sm:$0xff] }
  0x59   : > { %v493_v56 = vmul.f32 %v1233_v33, %v629_v20  ;;  %v772_v52 = vadd.f32 %v756_v19, %v719_v47  ;;  %v667_v57 = vadd.f32 %v651_v22, %v613_v48  ;;  %v334_v58 = vmul.f32 %v1215_v24, %v628_v0  ;;  %v686_v41 = vld [vmem:[#allocation2 + $0xa9] sm:$0xff] }
  0x5a   : > { %v561_v53 = vadd.f32 %v545_v23, %v508_v49  ;;  %v455_v42 = vadd.f32 %v439_v15, %v402_v54  ;;  %v546_v62 = vmul.f32 %v1238_v35, %v683_v34  ;;  %v387_v55 = vmul.f32 %v1221_v27, %v682_v7 }
  0x5b   : > { %v440_v59 = vmul.f32 %v1226_v29, %v735_v11  ;;  %788 = vst.msk [vmem:[%s1133_s20 + $0x30] sm:$0xff] %vm220_vm3, %v772_v52  ;;  %v720_v63 = vadd.f32 %v704_v39, %v667_v57  ;;  %v758_v2 = vmul.f32 %v1262_v46, %v737_v61  ;;  %v599_v3 = vmul.f32 %v1243_v37, %v736_v36  ;;  %v633_v52 = vld [vmem:[#allocation2 + $0xb0] sm:$0xff] }
  0x5c   : > { %v614_v1 = vadd.f32 %v598_v43, %v561_v53  ;;  %v509_v4 = vadd.f32 %v493_v56, %v455_v42  ;;  %v653_v0 = vmul.f32 %v1252_v44, %v631_v60  ;;  %v403_v5 = vadd.f32 %v387_v55, %v334_v58  ;;  %v739_v56 = vld [vmem:[#allocation2 + $0xaa] sm:$0xff] }
  0x5d   : > { %v494_v6 = vmul.f32 %v1233_v33, %v630_v50  ;;  %v773_v8 = vadd.f32 %v757_v40, %v720_v63  ;;  %v547_v9 = vmul.f32 %v1238_v35, %v684_v26  ;;  %v335_v10 = vmul.f32 %v1215_v24, %v629_v20  ;;  %v740_v63 = vld [vmem:[#allocation2 + $0xb2] sm:$0xff] }
  0x5e   : > { %v668_v7 = vadd.f32 %v652_v28, %v614_v1  ;;  %v562_v12 = vadd.f32 %v546_v62, %v509_v4  ;;  %v456_v16 = vadd.f32 %v440_v59, %v403_v5  ;;  %v388_v18 = vmul.f32 %v1221_v27, %v683_v34  ;;  %v687_v59 = vld [vmem:[#allocation2 + $0xb1] sm:$0xff] }
  0x5f   : > { %v441_v11 = vmul.f32 %v1226_v29, %v736_v36  ;;  %789 = vst.msk [vmem:[%s1133_s20 + $0x38] sm:$0xff] %vm220_vm3, %v773_v8  ;;  %v706_v21 = vmul.f32 %v1257_v45, %v685_v13  ;;  %v759_v19 = vmul.f32 %v1262_v46, %v738_v14  ;;  %v600_v22 = vmul.f32 %v1243_v37, %v737_v61 }
  0x60   : > { %v721_v17 = vadd.f32 %v705_v51, %v668_v7  ;;  %v615_v23 = vadd.f32 %v599_v3, %v562_v12  ;;  %v510_v20 = vadd.f32 %v494_v6, %v456_v16  ;;  %v404_v31 = vadd.f32 %v388_v18, %v335_v10  ;;  %v634_v7 = vld [vmem:[#allocation2 + $0xc0] sm:$0xff] }
  0x61   : > { %v495_v32 = vmul.f32 %v1233_v33, %v631_v60  ;;  %v654_v34 = vmul.f32 %v1252_v44, %v632_v25  ;;  %v548_v36 = vmul.f32 %v1238_v35, %v685_v13  ;;  %v336_v38 = vmul.f32 %v1215_v24, %v630_v50 }
  0x62   : > { %v774_v30 = vadd.f32 %v758_v2, %v721_v17  ;;  %v669_v39 = vadd.f32 %v653_v0, %v615_v23  ;;  %v563_v40 = vadd.f32 %v547_v9, %v510_v20  ;;  %v457_v15 = vadd.f32 %v441_v11, %v404_v31  ;;  %v688_v9 = vld [vmem:[#allocation2 + $0xc1] sm:$0xff] }
  0x63   : > { %v389_v47 = vmul.f32 %v1221_v27, %v684_v26  ;;  %v707_v48 = vmul.f32 %v1257_v45, %v686_v41  ;;  %v601_v49 = vmul.f32 %v1243_v37, %v738_v14  ;;  %v442_v43 = vmul.f32 %v1226_v29, %v737_v61 }
  0x64   : > { %790 = vst.msk [vmem:[%s1133_s20 + $0x40] sm:$0xff] %vm220_vm3, %v774_v30  ;;  %v496_v28 = vmul.f32 %v1233_v33, %v632_v25  ;;  %v722_v51 = vadd.f32 %v706_v21, %v669_v39  ;;  %v616_v54 = vadd.f32 %v600_v22, %v563_v40  ;;  %v511_v50 = vadd.f32 %v495_v32, %v457_v15  ;;  %v741_v21 = vld [vmem:[#allocation2 + $0xc2] sm:$0xff] }
  0x65   : > { %v405_v57 = vadd.f32 %v389_v47, %v336_v38  ;;  %v760_v53 = vmul.f32 %v1262_v46, %v739_v56  ;;  %v655_v26 = vmul.f32 %v1252_v44, %v633_v52  ;;  %v549_v58 = vmul.f32 %v1238_v35, %v686_v41 }
  0x66   : > { %v337_v42 = vmul.f32 %v1215_v24, %v631_v60  ;;  %v775_v62 = vadd.f32 %v759_v19, %v722_v51  ;;  %v670_v55 = vadd.f32 %v654_v34, %v616_v54  ;;  %v564_v61 = vadd.f32 %v548_v36, %v511_v50  ;;  %v635_v36 = vld [vmem:[#allocation2 + $0xc8] sm:$0xff]  ;;  %v636_v51 = vld [vmem:[#allocation2 + $0xd8] sm:$0xff] }
  0x67   : > { %v458_v1 = vadd.f32 %v442_v43, %v405_v57  ;;  %v708_v2 = vmul.f32 %v1257_v45, %v687_v59  ;;  %v761_v3 = vmul.f32 %v1262_v46, %v740_v63  ;;  %v390_v4 = vmul.f32 %v1221_v27, %v685_v13  ;;  %v689_v43 = vld [vmem:[#allocation2 + $0xc9] sm:$0xff] }
  0x68   : > { %v443_v0 = vmul.f32 %v1226_v29, %v738_v14  ;;  %791 = vst.msk [vmem:[%s1133_s20 + $0x48] sm:$0xff] %vm220_vm3, %v775_v62  ;;  %v723_v5 = vadd.f32 %v707_v48, %v670_v55  ;;  %v617_v6 = vadd.f32 %v601_v49, %v564_v61  ;;  %v602_v60 = vmul.f32 %v1243_v37, %v739_v56 }
  0x69   : > { %v512_v8 = vadd.f32 %v496_v28, %v458_v1  ;;  %v656_v10 = vmul.f32 %v1252_v44, %v634_v7  ;;  %v709_v12 = vmul.f32 %v1257_v45, %v688_v9  ;;  %v406_v16 = vadd.f32 %v390_v4, %v337_v42  ;;  %v637_v4 = vld [vmem:[#allocation2 + $0xe0] sm:$0xff] }
  0x6a   : > { %v497_v18 = vmul.f32 %v1233_v33, %v633_v52  ;;  %v776_v13 = vadd.f32 %v760_v53, %v723_v5  ;;  %v671_v11 = vadd.f32 %v655_v26, %v617_v6  ;;  %v338_v17 = vmul.f32 %v1215_v24, %v632_v25 }
  0x6b   : > { %v565_v14 = vadd.f32 %v549_v58, %v512_v8  ;;  %v459_v19 = vadd.f32 %v443_v0, %v406_v16  ;;  %v550_v22 = vmul.f32 %v1238_v35, %v687_v59  ;;  %v391_v23 = vmul.f32 %v1221_v27, %v686_v41  ;;  %v742_v58 = vld [vmem:[#allocation2 + $0xca] sm:$0xff] }
  0x6c   : > { %v444_v20 = vmul.f32 %v1226_v29, %v739_v56  ;;  %792 = vst.msk [vmem:[%s1133_s20 + $0x50] sm:$0xff] %vm220_vm3, %v776_v13  ;;  %v724_v31 = vadd.f32 %v708_v2, %v671_v11  ;;  %v762_v30 = vmul.f32 %v1262_v46, %v741_v21  ;;  %v603_v34 = vmul.f32 %v1243_v37, %v740_v63 }
  0x6d   : > { %v618_v32 = vadd.f32 %v602_v60, %v565_v14  ;;  %v513_v38 = vadd.f32 %v497_v18, %v459_v19  ;;  %v657_v25 = vmul.f32 %v1252_v44, %v635_v36  ;;  %v407_v39 = vadd.f32 %v391_v23, %v338_v17  ;;  %v691_v60 = vld [vmem:[#allocation2 + $0xe1] sm:$0xff] }
  0x6e   : > { %v498_v40 = vmul.f32 %v1233_v33, %v634_v7  ;;  %v777_v15 = vadd.f32 %v761_v3, %v724_v31  ;;  %v551_v47 = vmul.f32 %v1238_v35, %v688_v9  ;;  %v339_v48 = vmul.f32 %v1215_v24, %v633_v52  ;;  %v690_v24 = vld [vmem:[#allocation2 + $0xd9] sm:$0xff] }
  0x6f   : > { %v672_v41 = vadd.f32 %v656_v10, %v618_v32  ;;  %v566_v49 = vadd.f32 %v550_v22, %v513_v38  ;;  %v460_v28 = vadd.f32 %v444_v20, %v407_v39  ;;  %v392_v54 = vmul.f32 %v1221_v27, %v687_v59 }
  0x70   : > { %v445_v56 = vmul.f32 %v1226_v29, %v740_v63  ;;  %793 = vst.msk [vmem:[%s1133_s20 + $0x58] sm:$0xff] %vm220_vm3, %v777_v15  ;;  %v710_v57 = vmul.f32 %v1257_v45, %v689_v43  ;;  %v604_v53 = vmul.f32 %v1243_v37, %v741_v21  ;;  %v499_v62 = vmul.f32 %v1233_v33, %v635_v36  ;;  %v743_v63 = vld [vmem:[#allocation2 + $0xda] sm:$0xff] }
  0x71   : > { %v725_v50 = vadd.f32 %v709_v12, %v672_v41  ;;  %v619_v26 = vadd.f32 %v603_v34, %v566_v49  ;;  %v514_v42 = vadd.f32 %v498_v40, %v460_v28  ;;  %v408_v52 = vadd.f32 %v392_v54, %v339_v48  ;;  %v744_v12 = vld [vmem:[#allocation2 + $0xe2] sm:$0xff] }
  0x72   : > { %v763_v27 = vmul.f32 %v1262_v46, %v742_v58  ;;  %v658_v29 = vmul.f32 %v1252_v44, %v636_v51  ;;  %v552_v2 = vmul.f32 %v1238_v35, %v689_v43  ;;  %v711_v3 = vmul.f32 %v1257_v45, %v690_v24 }
  0x73   : > { %v778_v55 = vadd.f32 %v762_v30, %v725_v50  ;;  %v673_v61 = vadd.f32 %v657_v25, %v619_v26  ;;  %v567_v59 = vadd.f32 %v551_v47, %v514_v42  ;;  %v461_v1 = vadd.f32 %v445_v56, %v408_v52 }
  0x74   : > { %v605_v6 = vmul.f32 %v1243_v37, %v742_v58  ;;  %v764_v8 = vmul.f32 %v1262_v46, %v743_v63  ;;  %v659_v35 = vmul.f32 %v1252_v44, %v637_v4  ;;  %v712_v13 = vmul.f32 %v1257_v45, %v691_v60 }
  0x75   : > { %794 = vst.msk [vmem:[%s1133_s20 + $0x60] sm:$0xff] %vm220_vm3, %v778_v55  ;;  %v726_v0 = vadd.f32 %v710_v57, %v673_v61  ;;  %v620_v5 = vadd.f32 %v604_v53, %v567_v59  ;;  %v515_v33 = vadd.f32 %v499_v62, %v461_v1  ;;  %v765_v37 = vmul.f32 %v1262_v46, %v744_v12 }
  0x77   : > { %v779_v7 = vadd.f32 %v763_v27, %v726_v0  ;;  %v674_v9 = vadd.f32 %v658_v29, %v620_v5  ;;  %v568_v10 = vadd.f32 %v552_v2, %v515_v33 }
  0x79   : > { %795 = vst.msk [vmem:[%s1133_s20 + $0x68] sm:$0xff] %vm220_vm3, %v779_v7  ;;  %v727_v16 = vadd.f32 %v711_v3, %v674_v9  ;;  %v621_v18 = vadd.f32 %v605_v6, %v568_v10 }
  0x7b   : > { %v780_v11 = vadd.f32 %v764_v8, %v727_v16  ;;  %v675_v14 = vadd.f32 %v659_v35, %v621_v18 }
  0x7d   : > { %796 = vst.msk [vmem:[%s1133_s20 + $0x70] sm:$0xff] %vm220_vm3, %v780_v11  ;;  %v728_v17 = vadd.f32 %v712_v13, %v675_v14 }
  0x7f   : > { %v781_v21 = vadd.f32 %v765_v37, %v728_v17 }
  0x81   : > { %797 = vst.msk [vmem:[%s1133_s20 + $0x78] sm:$0xff] %vm220_vm3, %v781_v21 }
  0x82 PF: > { %s12_s11 = sadd.s32 1, %s1052_s11   ;;  %s1452_s9 = smov %s1048_s10 }
  0x83   : > { %p9_p1 = scmp.ge.s32.totalorder %s12_s11, 4   ;;  %s1453_s10 = smov %s1455_s12 }
  0x85   :  { %11 = sbr.rel (!%p9_p1) target bundleno = 2 (0x2), region = 96 }

</bundles_post_ra>
